<compile_context>
chip_gen: v7x
topology: tpu7x:2x2x1
jax: 0.10.0
libtpu: 0.0.40
codegen_flags: <defaults>
</compile_context>

<pallas_src>
import functools

import jax
import jax.numpy as jnp
from jax.experimental import pallas as pl
from jax.experimental.pallas import tpu as pltpu


def _cb_ce_kernel(x_ref, tgt_ref, w_ref, num_ref, den_ref, *, n_rows):
    # x_ref:   [TN, K]   logits tile (bf16 or f32)
    # tgt_ref: [TN, 1]   int32 class indices
    # w_ref:   [1,  K]   f32 class-balanced weights (resident: constant block idx)
    # num_ref: [1, 8, 128] f32 per-tile partial numerator   (lane-dense block)
    # den_ref: [1, 8, 128] f32 per-tile partial denominator
    i = pl.program_id(0)

    x = x_ref[...].astype(jnp.float32)          # in-kernel cast (free vs. DMA)
    tgt = tgt_ref[...]                          # [TN, 1] int32
    w = w_ref[...].astype(jnp.float32)          # [1, K]

    tn, k = x.shape

    # Mask rows that fall past the logical batch size (partial last tile).
    row_iota = jax.lax.broadcasted_iota(jnp.int32, (tn, 1), dimension=0)
    valid = (i * tn + row_iota) < n_rows        # [TN, 1] bool
    # Zero padded-row logits before any transcendental so all math stays finite.
    x = jnp.where(valid, x, 0.0)

    # Numerically stable logsumexp along classes (lane axis).
    m = jnp.max(x, axis=-1, keepdims=True)                         # [TN, 1]
    sumexp = jnp.sum(jnp.exp(x - m), axis=-1, keepdims=True)       # [TN, 1]

    # One-hot gather of target logit and class weight (no full logp tensor).
    class_ids = jax.lax.broadcasted_iota(jnp.int32, (tn, k), dimension=1)
    onehot = (class_ids == tgt).astype(jnp.float32)                # [TN, K]
    picked_x = jnp.sum(onehot * x, axis=-1, keepdims=True)         # [TN, 1]
    picked_w = jnp.sum(onehot * w, axis=-1, keepdims=True)         # [TN, 1]
    picked_w = jnp.where(valid, picked_w, 0.0)                     # kill padded rows

    picked_logp = picked_x - m - jnp.log(sumexp)                   # [TN, 1]

    num = jnp.sum(-picked_w * picked_logp)      # weighted NLL partial sum
    den = jnp.sum(picked_w)                     # weight partial sum

    num_ref[...] = jnp.full(num_ref.shape, num, dtype=jnp.float32)
    den_ref[...] = jnp.full(den_ref.shape, den, dtype=jnp.float32)


def class_balanced_cross_entropy(x, target, cb_weights, *, tile_rows=None):
    """x: [N, K] logits (f32/bf16); target: [N] int; cb_weights: [K] f32 -> scalar f32."""
    n, k = x.shape

    # --- choose a batch tile so the double-buffered tile fits scoped VMEM on
    # all generations (v7x: 32 MiB scoped / 64 MiB physical is the tightest).
    if tile_rows is None:
        budget = 8 * 1024 * 1024                     # ~8 MiB per x tile (f32)
        tile_rows = budget // max(1, k * 4)
    tile_rows = int(tile_rows)
    if tile_rows >= n:
        tile_rows = n                                # one full-extent block
    else:
        tile_rows = max(8, (tile_rows // 8) * 8)     # sublane multiple
    g = pl.cdiv(n, tile_rows)

    tgt2d = target.astype(jnp.int32).reshape(n, 1)
    w2d = cb_weights.astype(jnp.float32).reshape(1, k)

    kernel = functools.partial(_cb_ce_kernel, n_rows=n)

    itemsize = jnp.dtype(x.dtype).itemsize
    cost = pl.CostEstimate(
        flops=int(6 * n * k),
        transcendentals=int(n * k),
        bytes_accessed=int(n * k * itemsize + n * 4 + k * 4 + 2 * g * 8 * 128 * 4),
    )

    # Double-buffered inputs + the two small output blocks, with headroom;
    # clamped to stay inside v7x's 64 MiB physical VMEM.
    vmem_need = 2 * (tile_rows * k * itemsize + tile_rows * 4 + k * 4
                     + 2 * 8 * 128 * 4)
    vmem_limit = int(min(max(2 * vmem_need, 16 * 1024 * 1024), 48 * 1024 * 1024))

    num_out, den_out = pl.pallas_call(
        kernel,
        out_shape=(
            jax.ShapeDtypeStruct((g, 8, 128), jnp.float32),
            jax.ShapeDtypeStruct((g, 8, 128), jnp.float32),
        ),
        grid_spec=pltpu.PrefetchScalarGridSpec(
            num_scalar_prefetch=0,
            grid=(g,),
            in_specs=[
                pl.BlockSpec((tile_rows, k), lambda i: (i, 0)),   # logits tile
                pl.BlockSpec((tile_rows, 1), lambda i: (i, 0)),   # targets tile
                pl.BlockSpec((1, k), lambda i: (0, 0)),           # resident weights
            ],
            out_specs=[
                pl.BlockSpec((1, 8, 128), lambda i: (i, 0, 0)),
                pl.BlockSpec((1, 8, 128), lambda i: (i, 0, 0)),
            ],
        ),
        compiler_params=pltpu.CompilerParams(
            dimension_semantics=("parallel",),       # megacore-shardable on v7x
            vmem_limit_bytes=vmem_limit,
        ),
        cost_estimate=cost,
    )(x, tgt2d, w2d)

    num_total = jnp.sum(num_out[:, 0, 0])
    den_total = jnp.sum(den_out[:, 0, 0])
    return num_total / den_total


def make_cb_weights(num_samples, beta=0.99):
    # cb_weights = (1 - beta) / (1 - beta ** num_samples)   (module __init__)
    num_samples = num_samples.astype(jnp.float32)
    return (1.0 - beta) / (1.0 - jnp.power(beta, num_samples))


def _reference(x, target, cb_weights):
    logp = jax.nn.log_softmax(x.astype(jnp.float32), axis=-1)
    picked = jnp.take_along_axis(logp, target[:, None], axis=-1)[:, 0]
    w = cb_weights[target]
    return jnp.sum(-w * picked) / jnp.sum(w)


if __name__ == "__main__":
    key = jax.random.PRNGKey(0)
    N, K = 10, 32            # batch=10 (non-multiple of tile to exercise masking), 32 classes
    beta = 0.99

    k1, k2, k3 = jax.random.split(key, 3)
    x = jax.random.normal(k1, (N, K), dtype=jnp.float32)
    target = jax.random.randint(k2, (N,), 0, K, dtype=jnp.int32)
    # deterministic synthetic per-class sample counts (module __init__ input)
    num_samples = jax.random.randint(k3, (K,), 1, 500, dtype=jnp.int32)

    cb_w = make_cb_weights(num_samples, beta=beta)

    loss = class_balanced_cross_entropy(x, target, cb_w, tile_rows=8)
    loss = jax.block_until_ready(loss)

    ref = _reference(x, target, cb_w)
    assert jnp.allclose(loss, ref, rtol=1e-5, atol=1e-5), (loss, ref)
    print("KERNEL_OK")
</pallas_src>

<mosaic_0001>
module attributes {stable_mosaic.version = 11 : i64} {
  func.func @_cb_ce_kernel(%arg0: i32, %arg1: memref<8x32xf32, #tpu.memory_space<vmem>>, %arg2: memref<8x1xi32, #tpu.memory_space<vmem>>, %arg3: memref<1x32xf32, #tpu.memory_space<vmem>>, %arg4: memref<1x8x128xf32, #tpu.memory_space<vmem>>, %arg5: memref<1x8x128xf32, #tpu.memory_space<vmem>>) attributes {dimension_semantics = [#tpu.dimension_semantics<parallel>], iteration_bounds = array<i64: 2>, scalar_prefetch = 0 : i64, scratch_operands = 0 : i64, tpu.core_type = #tpu.core_type<tc>, window_params = [{transform_indices = @transform_0, window_bounds = array<i64: 8, 32>}, {transform_indices = @transform_1, window_bounds = array<i64: 8, 1>}, {pipeline_mode = #tpu.pipeline_mode<synchronous>, transform_indices = @transform_2, window_bounds = array<i64: 1, 32>}, {transform_indices = @transform_3, window_bounds = array<i64: 1, 8, 128>}, {transform_indices = @transform_4, window_bounds = array<i64: 1, 8, 128>}]} {
    %c0 = arith.constant 0 : index
    %c0_0 = arith.constant 0 : index
    %0 = vector.load %arg1[%c0, %c0_0] : memref<8x32xf32, #tpu.memory_space<vmem>>, vector<8x32xf32>
    %c0_1 = arith.constant 0 : index
    %c0_2 = arith.constant 0 : index
    %1 = vector.load %arg2[%c0_1, %c0_2] : memref<8x1xi32, #tpu.memory_space<vmem>>, vector<8x1xi32>
    %c0_3 = arith.constant 0 : index
    %c0_4 = arith.constant 0 : index
    %2 = vector.load %arg3[%c0_3, %c0_4] : memref<1x32xf32, #tpu.memory_space<vmem>>, vector<1x32xf32>
    %3 = tpu.iota {dimensions = array<i32: 0>} : vector<8x1xi32>
    %c8_i32 = arith.constant 8 : i32
    %4 = arith.muli %arg0, %c8_i32 : i32
    %5 = vector.broadcast %4 : i32 to vector<8x1xi32>
    %6 = arith.addi %5, %3 : vector<8x1xi32>
    %c10_i32 = arith.constant 10 : i32
    %7 = vector.broadcast %c10_i32 : i32 to vector<8x1xi32>
    %8 = arith.cmpi slt, %6, %7 : vector<8x1xi32>
    %cst = arith.constant 0.000000e+00 : f32
    %9 = vector.shape_cast %8 : vector<8x1xi1> to vector<8x1xi1>
    %10 = vector.broadcast %9 : vector<8x1xi1> to vector<8x32xi1>
    %11 = vector.broadcast %cst : f32 to vector<8x32xf32>
    %12 = arith.select %10, %0, %11 : vector<8x32xi1>, vector<8x32xf32>
    %cst_5 = arith.constant dense<0xFF800000> : vector<8xf32>
    %13 = vector.multi_reduction <maximumf>, %12, %cst_5 [1] : vector<8x32xf32> to vector<8xf32>
    %14 = vector.shape_cast %13 : vector<8xf32> to vector<8x1xf32>
    %15 = vector.broadcast %14 : vector<8x1xf32> to vector<8x32xf32>
    %16 = arith.subf %12, %15 : vector<8x32xf32>
    %17 = math.exp %16 : vector<8x32xf32>
    %cst_6 = arith.constant dense<0.000000e+00> : vector<8xf32>
    %18 = vector.multi_reduction <add>, %17, %cst_6 [1] : vector<8x32xf32> to vector<8xf32>
    %19 = vector.shape_cast %18 : vector<8xf32> to vector<8x1xf32>
    %20 = tpu.iota {dimensions = array<i32: 1>} : vector<8x32xi32>
    %21 = vector.broadcast %1 : vector<8x1xi32> to vector<8x32xi32>
    %22 = arith.cmpi eq, %20, %21 : vector<8x32xi32>
    %23 = arith.extui %22 : vector<8x32xi1> to vector<8x32xi32>
    %24 = arith.sitofp %23 : vector<8x32xi32> to vector<8x32xf32>
    %25 = arith.mulf %24, %12 : vector<8x32xf32>
    %cst_7 = arith.constant dense<0.000000e+00> : vector<8xf32>
    %26 = vector.multi_reduction <add>, %25, %cst_7 [1] : vector<8x32xf32> to vector<8xf32>
    %27 = vector.shape_cast %26 : vector<8xf32> to vector<8x1xf32>
    %28 = vector.broadcast %2 : vector<1x32xf32> to vector<8x32xf32>
    %29 = arith.mulf %24, %28 : vector<8x32xf32>
    %cst_8 = arith.constant dense<0.000000e+00> : vector<8xf32>
    %30 = vector.multi_reduction <add>, %29, %cst_8 [1] : vector<8x32xf32> to vector<8xf32>
    %31 = vector.shape_cast %30 : vector<8xf32> to vector<8x1xf32>
    %cst_9 = arith.constant 0.000000e+00 : f32
    %32 = vector.broadcast %cst_9 : f32 to vector<8x1xf32>
    %33 = arith.select %8, %31, %32 : vector<8x1xi1>, vector<8x1xf32>
    %34 = arith.subf %27, %14 : vector<8x1xf32>
    %35 = math.log %19 : vector<8x1xf32>
    %36 = arith.subf %34, %35 : vector<8x1xf32>
    %cst_10 = arith.constant 0.000000e+00 : f32
    %37 = vector.broadcast %cst_10 : f32 to vector<8x1xf32>
    %38 = arith.subf %37, %33 : vector<8x1xf32>
    %39 = arith.mulf %38, %36 : vector<8x1xf32>
    %40 = vector.shape_cast %39 : vector<8x1xf32> to vector<1x8x1xf32>
    %cst_11 = arith.constant dense<0.000000e+00> : vector<1xf32>
    %41 = vector.multi_reduction <add>, %40, %cst_11 [1, 2] : vector<1x8x1xf32> to vector<1xf32>
    %42 = vector.shape_cast %41 : vector<1xf32> to vector<1x1x1xf32>
    %43 = vector.extract %42[0, 0, 0] : f32 from vector<1x1x1xf32>
    %44 = vector.shape_cast %33 : vector<8x1xf32> to vector<1x8x1xf32>
    %cst_12 = arith.constant dense<0.000000e+00> : vector<1xf32>
    %45 = vector.multi_reduction <add>, %44, %cst_12 [1, 2] : vector<1x8x1xf32> to vector<1xf32>
    %46 = vector.shape_cast %45 : vector<1xf32> to vector<1x1x1xf32>
    %47 = vector.extract %46[0, 0, 0] : f32 from vector<1x1x1xf32>
    %48 = vector.broadcast %43 : f32 to vector<1x8x128xf32>
    %c0_13 = arith.constant 0 : index
    %c0_14 = arith.constant 0 : index
    %c0_15 = arith.constant 0 : index
    %49 = vector.load %arg4[%c0_13, %c0_14, %c0_15] : memref<1x8x128xf32, #tpu.memory_space<vmem>>, vector<1x8x128xf32>
    tpu.vector_store %arg4[%c0_13, %c0_14, %c0_15], %48 {strides = array<i32>} : memref<1x8x128xf32, #tpu.memory_space<vmem>>, vector<1x8x128xf32>,
    %50 = vector.broadcast %47 : f32 to vector<1x8x128xf32>
    %c0_16 = arith.constant 0 : index
    %c0_17 = arith.constant 0 : index
    %c0_18 = arith.constant 0 : index
    %51 = vector.load %arg5[%c0_16, %c0_17, %c0_18] : memref<1x8x128xf32, #tpu.memory_space<vmem>>, vector<1x8x128xf32>
    tpu.vector_store %arg5[%c0_16, %c0_17, %c0_18], %50 {strides = array<i32>} : memref<1x8x128xf32, #tpu.memory_space<vmem>>, vector<1x8x128xf32>,
    return
  }
  func.func @transform_0(%arg0: i32) -> (i32, i32) {
    %c0_i32 = arith.constant 0 : i32
    %c0_i32_0 = arith.constant 0 : i32
    return %arg0, %c0_i32 : i32, i32
  }
  func.func @transform_1(%arg0: i32) -> (i32, i32) {
    %c0_i32 = arith.constant 0 : i32
    %c0_i32_0 = arith.constant 0 : i32
    return %arg0, %c0_i32 : i32, i32
  }
  func.func @transform_2(%arg0: i32) -> (i32, i32) {
    %c0_i32 = arith.constant 0 : i32
    %c0_i32_0 = arith.constant 0 : i32
    %c0_i32_1 = arith.constant 0 : i32
    return %c0_i32, %c0_i32_0 : i32, i32
  }
  func.func @transform_3(%arg0: i32) -> (i32, i32, i32) {
    %c0_i32 = arith.constant 0 : i32
    %c0_i32_0 = arith.constant 0 : i32
    %c0_i32_1 = arith.constant 0 : i32
    return %arg0, %c0_i32, %c0_i32_0 : i32, i32, i32
  }
  func.func @transform_4(%arg0: i32) -> (i32, i32, i32) {
    %c0_i32 = arith.constant 0 : i32
    %c0_i32_0 = arith.constant 0 : i32
    %c0_i32_1 = arith.constant 0 : i32
    return %arg0, %c0_i32, %c0_i32_0 : i32, i32, i32
  }
}

</mosaic_0001>

<bundles_post_ra>
// kernel: tpu_custom_call.1
= control target key start
LH: loop header
LB: loop body
LE: loop exit
PB: predicated region body
PF: predicated region fallthrough
CT: control target
= control target key end

     0   :  { %10 = vsyncpa [#allocation3], 0  ;;  %s783_s0 = inlined_call_operand.vmem [shape: f32[10,32], index: 0, kind: input, shape index: {}]   ;;  %s784_s1 = inlined_call_operand.vmem [shape: s32[10,1], index: 1, kind: input, shape index: {}]   ;;  %s785_s2 = inlined_call_operand.vmem [shape: f32[1,32], index: 2, kind: input, shape index: {}]   ;;  %s786_s3 = inlined_call_operand.hbm [shape: f32[2,8,128], index: 3, kind: output, shape index: {0}]   ;;  %s787_s4 = inlined_call_operand.hbm [shape: f32[2,8,128], index: 4, kind: output, shape index: {1}]  }
   0x1   :  { %12 = vsyncpa [#allocation3 + $0x1], 0 }
   0x2   :  { %13 = vsyncpa [#allocation5], 0 }
   0x3   :  { %15 = vsyncpa [#allocation5 + $0x1], 0  ;;  %s629_s15 = smov 0   ;;  %s631_s16 = smov 0  }
   0x4   :  { %s633_s17 = smov 0   ;;  %s635_s18 = smov 0  }
   0x5 LB: > { %s650_s19 = sadd.s32 4294967295, %s598_s18   ;;  %s432_s20 = sadd.s32 4294967294, %s598_s18   ;;  %s598_s18 = sphi %s635_s18, %s793_s18   ;;  %s594_s17 = sphi %s633_s17, %s792_s17   ;;  %s590_s16 = sphi %s631_s16, %s791_s16   ;;  %s586_s15 = sphi %s629_s15, %s790_s15  }
   0x6   : > { %s654_s21 = sadd.s32 1, %s598_s18   ;;  %s101_s22 = sadd.s32 1, %s594_s17 }
   0x7   : > { %s98_s23 = ssub.s32 %s598_s18, %s654_s21  ;;  %p111_p0 = scmp.ne.s32.totalorder %s594_s17, %s590_s16 }
   0x8   : > { %p99_p1 = scmp.eq.s32.totalorder %s98_s23, 0  ;;  %p112_p2 = scmp.eq.s32.totalorder %s650_s19, 1 }
   0x9   : > { %p117_p3 = scmp.ne.s32.totalorder %s590_s16, %s586_s15  ;;  %p118_p4 = scmp.eq.s32.totalorder %s432_s20, 1 }
   0xa   : > { %s665_s24 = scalar_select %p99_p1, %s594_s17, %s101_s22  }
   0xb   : > { %p667_p5 = por %p112_p2, %p111_p0  ;;  %p671_p6 = por %p118_p4, %p117_p3 }
   0xc   : > { %p435_p7 = scmp.ge.s32.totalorder %s598_s18, 1  ;;  %p179_p8 = scmp.lt.s32.totalorder %s598_s18, 3 }
   0xe   : > { %p180_p9 = pnand %p435_p7, %p179_p8 }
   0xf   : > { %p213_p10 = scmp.lt.s32.totalorder (!%p180_p9), %s650_s19, 1  ;;  %v224_v0 = vlaneseq (!%p180_p9)  ;;  %s440_s27 = sshll.u32 (!%p180_p9), %s650_s19, 3  ;;  %v600_v2 = vmov (!%p180_p9), 0   ;;  %vm233_vm0 = vcmask (!%p180_p9), 261120   ;;  %v601_v14 = vmov (!%p180_p9), 0.0  }
  0x10   : > { %183 = sbr.rel (%p180_p9) target bundleno = 591 (0x24f), region = 32  ;;  %v227_v1 = vstv (!%p180_p9), %s440_s27  ;;  %499 = vset.pattern.permute.xlu0 (!%p180_p9), %v600_v2  ;;  %v442_v18 = vld [vmem:[%s785_s2] ss:$0 sm:$0xff] (!%p180_p9)  ;;  %vm272_vm3 = vcmask (!%p180_p9), 7168   ;;  %s696_s12 = sand.u32 (!%p180_p9), 1, %s590_s16  }
  0x11   : > { %v225_v3 = vshrl.u32 (!%p180_p9), %v224_v0, 7  ;;  %v244_v12 = vand.u32 (!%p180_p9), 127, %v224_v0  ;;  %s436_s13 = sshll.u32 (!%p180_p9), %s696_s12, 3  ;;  %s445_s14 = sshll.u32 (!%p180_p9), %s650_s19, 7 }
  0x12   : > { %s205_s20 = scalar_lea.vmem (!%p180_p9), [#allocation2], %s436_s13  ;;  %s700_s23 = scalar_lea.vmem (!%p180_p9), [#allocation4], %s436_s13 }
  0x13   : > { %v228_v4 = vadd.s32 (!%p180_p9), %v227_v1, %v225_v3  ;;  %s316_s22 = sshll.u32 (!%p180_p9), %s205_s20, 4  ;;  %s329_s27 = sshll.u32 (!%p180_p9), %s700_s23, 4  ;;  %s710_s22 = int_to_ptr.vmem [resolvable:$true] %s316_s22  ;;  %s712_s27 = int_to_ptr.vmem [resolvable:$true] %s329_s27 }
  0x14   : > { %s708_s30 = scalar_lea.hbm (!%p180_p9), %s786_s3, %s445_s14  ;;  %s504_s7 = scalar_lea.vmem (!%p180_p9), %s710_s22, 128 }
  0x15   : > { %vm229_vm1 = vcmp.lt.s32.totalorder (!%p180_p9), %v228_v4, 10  ;;  %p505_p11 = scmp.ne.s32.totalorder (!%p180_p9), %s710_s22, %s504_s7  ;;  %s602_s8 = smov (!%p180_p9), [#allocation2]  }
  0x17   : > { %s214_s28 = scalar_select %p213_p10, %s650_s19, 1 }
  0x18   : > { %p506_p12 = pnand %p505_p11, %p667_p5 }
  0x19   : > { %s438_s29 = sshll.u32 %s214_s28, 3 }
  0x1a   : > { %s216_s6 = scalar_lea.vmem %s783_s0, %s438_s29  ;;  %s220_s9 = scalar_lea.vmem %s784_s1, %s438_s29 }
  0x1b   : > { %v221_v5 = vld [vmem:[%s216_s6] sm:$0xff]  ;;  %s298_s6 = scalar_lea.sflag [#allocation3], %s696_s12  ;;  %p507_p13 = pneg %p506_p12 }
  0x1c   : > { %v232_v6 = vsel %vm229_vm1, %v221_v5, 0.0  ;;  %v222_v8 = vld [vmem:[%s220_s9] sm:$0xff]  ;;  %s508_s9 = sshll.u32 %s602_s8, 4  ;;  %s509_s9 = int_to_ptr.vmem [resolvable:$false] %s508_s9 }
  0x1d   : > { %v234_v7 = vsel %vm233_vm0, %v232_v6, -inf  ;;  %s510_s10 = scalar_lea.vmem %s509_s9, 256  ;;  %p511_p0 = scmp.lt.s32.totalorder %s710_s22, %s509_s9 }
  0x1e   : > { %235 = vmax.xlane.f32.xlu0 %v234_v7  ;;  %p512_p1 = scmp.lt.s32.totalorder %s510_s10, %s504_s7 }
  0x20   : > { %p513_p2 = por %p512_p1, %p511_p0 }
  0x22   : > { %p514_p3 = pnand %p513_p2, %p507_p13 }
  0x34   : > { %246 = vperm.xlu0 %499, %v222_v8  }
  0xab   : > { %v236_v9 = vpop.xlane.xlu0 %235 }
  0xac   : > { %v237_v10 = vsub.f32 %v232_v6, %v236_v9 }
  0xae   : > { %v238_v11 = vmul.f32 1.442695, %v237_v10 }
  0xb0   : > { %500 = vpow2.f32 %v238_v11 }
  0xb3   : > { %v247_v13 = vpop.permute.xlu0 %246 }
  0xb4   : > { %vm248_vm2 = vcmp.eq.s32.totalorder %v244_v12, %v247_v13 }
  0xb5   : > { %v441_v15 = vsel %vm248_vm2, 1.0, %v601_v14 }
  0xb6   : > { %v251_v16 = vmul.f32 %v441_v15, %v232_v6  ;;  %v261_v21 = vmul.f32 %v442_v18, %v441_v15 }
  0xb8   : > { %v252_v20 = vsel %vm233_vm0, %v251_v16, 0.0  ;;  %v262_v22 = vsel %vm233_vm0, %v261_v21, 0.0 }
  0xba   : > { %v501_v17 = vpop.eup %500 }
  0xbb   : > { %v240_v19 = vsel %vm233_vm0, %v501_v17, 0.0 }
  0xbc   : > { %241 = vadd.xlane.f32.xlu1 %v240_v19 }
  0xc0   : > { %253 = vadd.xlane.f32.xlu1 %v252_v20 }
  0xc4   : > { %263 = vadd.xlane.f32.xlu1 %v262_v22 }
 0x149   : > { %v242_v23 = vpop.xlane.xlu1 %241 }
 0x14a   : > { %502 = vlog2.f32 %v242_v23 }
 0x14d   : > { %v254_v24 = vpop.xlane.xlu1 %253 }
 0x14e   : > { %v266_v29 = vsub.f32 %v254_v24, %v236_v9 }
 0x151   : > { %v264_v25 = vpop.xlane.xlu1 %263 }
 0x152   : > { %v265_v27 = vsel %vm229_vm1, %v264_v25, 0.0 }
 0x153   : > { %v270_v31 = vsub.f32 0.0, %v265_v27  ;;  %v283_v34 = vsel %vm272_vm3, %v265_v27, 0.0 }
 0x154   : > { %v503_v26 = vpop.eup %502 }
 0x155   : > { %v268_v28 = vmul.f32 0.6931472, %v503_v26 }
 0x157   : > { %v269_v30 = vsub.f32 %v266_v29, %v268_v28 }
 0x159   : > { %v271_v32 = vmul.f32 %v270_v31, %v269_v30 }
 0x15b   : > { %v273_v33 = vsel %vm272_vm3, %v271_v32, 0.0 }
 0x15c   : > { %274 = vadd.xlane.f32.xlu1 %v273_v33 }
 0x160   : > { %284 = vadd.xlane.f32.xlu1 %v283_v34 }
 0x1e9   : > { %v275_v35 = vpop.xlane.xlu1 %274 }
 0x1ea   : > { %v276_v36 = vrot.slane %v275_v35, 4 }
 0x1ec   : > { %v277_v37 = vadd.f32 %v276_v36, %v275_v35 }
 0x1ed   : > { %v285_v38 = vpop.xlane.xlu1 %284 }
 0x1ee   : > { %v278_v39 = vrot.slane %v277_v37, 2  ;;  %v286_v40 = vrot.slane %v285_v38, 4 }
 0x1f0   : > { %v287_v41 = vadd.f32 %v286_v40, %v285_v38  ;;  %v279_v42 = vadd.f32 %v278_v39, %v277_v37 }
 0x1f2   : > { %v288_v43 = vrot.slane %v287_v41, 2  ;;  %v280_v44 = vrot.slane %v279_v42, 1 }
 0x1f4   : > { %v289_v45 = vadd.f32 %v288_v43, %v287_v41  ;;  %v281_v46 = vadd.f32 %v280_v44, %v279_v42 }
 0x1f6   : > { %449 = vpush %v281_v46  ;;  %v290_v47 = vrot.slane %v289_v45, 1 }
 0x1f8   : > { %v291_v48 = vadd.f32 %v290_v47, %v289_v45 }
 0x1fa   : > { %451 = vpush %v291_v48 }
 0x227   : > { %s450_s5 = spop %449 }
 0x228   : > { %v293_v49 = vstv %s450_s5 }
 0x229   : > { %294 = vst [vmem:[%s205_s20] sm:$0xff] %v293_v49 }
 0x22a   : > { %517 = shalt.err (!%p514_p3)
}
 0x22b   : > { %s518_s11 = scalar_lea.hbm %s708_s30, 128  ;;  %s522_s28 = scalar_lea.hbm %s786_s3, 256 }
 0x22c   : > { %p519_p4 = scmp.ne.s32.totalorder %s708_s30, %s518_s11  ;;  %p523_p9 = scmp.lt.u32.totalorder %s708_s30, %s786_s3 }
 0x22d   : > { %p524_p10 = scmp.lt.u32.totalorder %s522_s28, %s518_s11  ;;  %p526_p12 = scmp.lt.u32.totalorder %s518_s11, %s708_s30 }
 0x22e   : > { %p520_p7 = pnand %p519_p4, %p667_p5 }
 0x22f   : > { %p525_p11 = por %p524_p10, %p523_p9 }
 0x230   : > { %p521_p8 = pneg %p520_p7 }
 0x231   : > { %p527_p13 = por %p526_p12, %p525_p11 }
 0x233   : > { %p528_p0 = pnand %p527_p13, %p521_p8 }
 0x235   : > { %531 = shalt.err (!%p528_p0)
}
 0x236   : > { %453 = dma.vmem_to_hbm [thread:$0]  (%p667_p5), %s710_s22, 128, %s708_s30, %s298_s6  }
 0x237   : > { %s452_s7 = spop %451  ;;  %s741_s10 = scalar_lea.hbm %s787_s4, %s445_s14 }
 0x238   : > { %v295_v50 = vstv %s452_s7  ;;  %s303_s11 = scalar_lea.sflag [#allocation5], %s696_s12  ;;  %s532_s13 = scalar_lea.vmem %s712_s27, 128 }
 0x239   : > { %296 = vst [vmem:[%s700_s23] sm:$0xff] %v295_v50  ;;  %p533_p1 = scmp.ne.s32.totalorder %s712_s27, %s532_s13  ;;  %s603_s20 = smov [#allocation4]  }
 0x23a   : > { %s536_s28 = sshll.u32 %s603_s20, 4  ;;  %s537_s28 = int_to_ptr.vmem [resolvable:$false] %s536_s28 }
 0x23b   : > { %p534_p2 = pnand %p533_p1, %p667_p5  ;;  %s538_s29 = scalar_lea.vmem %s537_s28, 256 }
 0x23c   : > { %p539_p4 = scmp.lt.s32.totalorder %s712_s27, %s537_s28  ;;  %p540_p7 = scmp.lt.s32.totalorder %s538_s29, %s532_s13 }
 0x23d   : > { %p535_p3 = pneg %p534_p2 }
 0x23e   : > { %p541_p8 = por %p540_p7, %p539_p4 }
 0x240   : > { %p542_p9 = pnand %p541_p8, %p535_p3 }
 0x242   : > { %545 = shalt.err (!%p542_p9)
}
 0x243   : > { %s546_s19 = scalar_lea.hbm %s741_s10, 128  ;;  %s550_s22 = scalar_lea.hbm %s787_s4, 256 }
 0x244   : > { %p547_p10 = scmp.ne.s32.totalorder %s741_s10, %s546_s19  ;;  %p551_p13 = scmp.lt.u32.totalorder %s741_s10, %s787_s4 }
 0x245   : > { %p552_p0 = scmp.lt.u32.totalorder %s550_s22, %s546_s19  ;;  %p554_p2 = scmp.lt.u32.totalorder %s546_s19, %s741_s10 }
 0x246   : > { %p548_p11 = pnand %p547_p10, %p667_p5 }
 0x247   : > { %p553_p1 = por %p552_p0, %p551_p13 }
 0x248   : > { %p549_p12 = pneg %p548_p11 }
 0x249   : > { %p555_p3 = por %p554_p2, %p553_p1 }
 0x24b   : > { %p556_p4 = pnand %p555_p3, %p549_p12 }
 0x24d   : > { %559 = shalt.err (!%p556_p4)
}
 0x24e   : > { %454 = dma.vmem_to_hbm [thread:$0]  (%p667_p5), %s712_s27, 128, %s741_s10, %s303_s11  }
 0x24f PF: > { %p464_p7 = scmp.ge.s32.totalorder %s598_s18, 2  ;;  %s341_s6 = sand.u32 1, %s586_s15  }
 0x250   : > { %s342_s5 = scalar_lea.sflag [#allocation3], %s341_s6 }
 0x251   : > { %p458_p8 = pnand %p464_p7, %p671_p6 }
 0x253   : > { %577 = dma.done.wait (!%p458_p8), %s342_s5, 128  }
 0x254   : > { %579 = vsyncadd (!%p458_p8), %s342_s5, 4294967168  ;;  %s351_s7 = scalar_lea.sflag [#allocation5], %s341_s6 }
 0x255   : > { %581 = dma.done.wait (!%p458_p8), %s351_s7, 128  }
 0x256   : > { %583 = vsyncadd (!%p458_p8), %s351_s7, 4294967168  ;;  %p18_p5 = scmp.ge.s32.totalorder %s654_s21, 4   ;;  %s790_s15 = smov %s590_s16 }
 0x257   : > { %s791_s16 = smov %s594_s17  ;;  %s792_s17 = smov %s665_s24 }
 0x258   : > { %s793_s18 = smov %s654_s21  ;;  %20 = sbr.rel (!%p18_p5) target bundleno = 5 (0x5), region = 87 }
 0x25f   :  { %356 = vsyncpa [#allocation3], 1 }
 0x260   :  { %358 = vsyncpa [#allocation3 + $0x1], 1 }
 0x261   :  { %359 = vsyncpa [#allocation5], 1 }
 0x262   :  { %361 = vsyncpa [#allocation5 + $0x1], 1 }

</bundles_post_ra>
